<compile_context>
chip_gen: v7x
topology: tpu7x:2x2x1
jax: 0.10.0
libtpu: 0.0.40
codegen_flags: <defaults>
</compile_context>

<pallas_src>
import functools

import numpy as np

import jax
import jax.numpy as jnp
from jax import lax
from jax.experimental import pallas as pl
from jax.experimental.pallas import tpu as pltpu


def _mhsa_kernel(x_ref, wqkv_ref, bqkv_ref, mask_ref,
                 attn_ref, ws_ref, avg_ref, *,
                 num_heads, head_dim, feature_dim, seq_len, batch_block):
    """One batch block per grid step.

    x_ref    : (BB, L, F)
    wqkv_ref : (F, 3F)        packed [Wq*scale | Wk | Wv], (in, out) layout
    bqkv_ref : (1, 3F)        packed [bq*scale | bk | bv]
    mask_ref : (M, M) f32     block-diagonal 0/1 validity mask, M = H*BB*L
    attn_ref : (BB*L, H*L)    attention weights slab
    ws_ref   : (BB*L, F)      weighted_sum slab
    avg_ref  : (BB, F)        weighted_avg slab
    """
    H, D, F, L, BB = num_heads, head_dim, feature_dim, seq_len, batch_block
    R = BB * L          # rows of the folded (batch*seq) projection matmul
    M = H * R           # rows of the head-stacked attention problem

    # ---- fused QKV projection: one MXU pass over the whole block -----------
    x2 = x_ref[...].reshape(R, F)                                     # (R, F)
    qkv = jnp.dot(x2, wqkv_ref[...],
                  preferred_element_type=jnp.float32) + bqkv_ref[...]  # (R, 3F)

    q = qkv[:, 0 * F:1 * F]          # already scaled by 1/sqrt(D) (folded in W)
    k = qkv[:, 1 * F:2 * F]
    v = qkv[:, 2 * F:3 * F]

    # ---- stack heads along the M (sublane) axis -----------------------------
    # rows of *_st are ordered (h, bb, l); lanes are the head_dim D.
    q_st = jnp.concatenate([q[:, h * D:(h + 1) * D] for h in range(H)], axis=0)
    k_st = jnp.concatenate([k[:, h * D:(h + 1) * D] for h in range(H)], axis=0)
    v_st = jnp.concatenate([v[:, h * D:(h + 1) * D] for h in range(H)], axis=0)

    # ---- ONE Gram matmul for every head and batch element -------------------
    dn = (((1,), (1,)), ((), ()))                 # contract last dims (q @ k^T)
    gram = lax.dot_general(q_st, k_st, dn,
                           preferred_element_type=jnp.float32)         # (M, M)

    # Only entries within the same (head, batch) group (the diagonal L x L
    # blocks) are valid; off-diagonal FLOPs were free on the otherwise-idle MXU.
    maskf = mask_ref[...]                                               # (M, M)
    neg = jnp.float32(-1e30)
    s = gram + (maskf - 1.0) * (-neg)        # valid: gram ; invalid: ~ -1e30
    rowmax = jnp.max(s, axis=-1, keepdims=True)
    e = jnp.exp(s - rowmax) * maskf          # off-diagonal exactly zero
    denom = jnp.sum(e, axis=-1, keepdims=True)
    r = pl.reciprocal(denom, approx=True)    # EUP slot (frees the VALU divide)
    r = r * (2.0 - denom * r)                # one Newton step -> ~f32 exact
    attn_bd = e * r                          # block-diagonal softmax, (M, M)

    # ---- ONE attn @ V matmul for every head and batch element ---------------
    out_st = jnp.dot(attn_bd, v_st, preferred_element_type=jnp.float32)  # (M, D)

    # ---- assemble outputs; exactly one store per output ref ------------------
    # weighted_sum rows ordered (bb, l), lanes = F with head-major D blocks.
    ws_parts = [out_st[h * R:(h + 1) * R, :] for h in range(H)]
    ws_all = jnp.concatenate(ws_parts, axis=1) if H > 1 else ws_parts[0]  # (R, F)

    # attention weights: attn_all[bb*L + l, h*L + m] = attn(bb, h, l, m)
    cols = []
    for h in range(H):
        blocks = []
        for bb in range(BB):
            base = h * R + bb * L
            blocks.append(attn_bd[base:base + L, base:base + L])        # (L, L)
        cols.append(jnp.concatenate(blocks, axis=0) if BB > 1 else blocks[0])
    attn_all = jnp.concatenate(cols, axis=1) if H > 1 else cols[0]      # (R, H*L)

    # weighted_avg: per batch element, mean of weighted_sum over the L rows.
    avg_rows = [jnp.mean(ws_all[bb * L:(bb + 1) * L, :], axis=0, keepdims=True)
                for bb in range(BB)]
    avg_all = jnp.concatenate(avg_rows, axis=0) if BB > 1 else avg_rows[0]

    attn_ref[...] = attn_all
    ws_ref[...] = ws_all
    avg_ref[...] = avg_all


def _num_batch_blocks(batch, seq_len, feature_dim):
    """2-way grid split only when per-block work is big enough to amortize the
    fixed per-grid-step cost and the duplicated weight DMA; otherwise 1."""
    if batch % 16 != 0:              # keep (8,128)-friendly block shapes
        return 1
    per_block_bytes = (batch // 2) * seq_len * feature_dim * 4
    return 2 if per_block_bytes >= (256 << 10) else 1


def multi_head_self_attention(x, wq, bq, wk, bk, wv, bv, *, num_heads):
    """Returns (attention_weights (B,H,L,L), weighted_avg_out (B,1,F),
    weighted_sum (B,L,F)) — same order/semantics as the PyTorch module
    (mask=None path)."""
    B, L, F = x.shape
    assert F % num_heads == 0, "feature_dim must be divisible by num_heads"
    D = F // num_heads
    scale = 1.0 / (D ** 0.5)

    # Fold the 1/sqrt(D) score scale into the Q projection (fuses into the
    # concatenate we already pay for) and pack QKV for one fused projection.
    wqkv = jnp.concatenate([wq * scale, wk, wv], axis=1)            # (F, 3F)
    bqkv = jnp.concatenate([bq * scale, bk, bv]).reshape(1, 3 * F)  # (1, 3F)

    n_blocks = _num_batch_blocks(B, L, F)
    BB = B // n_blocks
    M = num_heads * BB * L

    # Constant block-diagonal validity mask (same (head, batch) group).
    maskf = jnp.asarray(
        np.kron(np.eye(M // L, dtype=np.float32),
                np.ones((L, L), dtype=np.float32)))                 # (M, M)

    kernel = functools.partial(_mhsa_kernel, num_heads=num_heads, head_dim=D,
                               feature_dim=F, seq_len=L, batch_block=BB)

    out_shapes = (
        jax.ShapeDtypeStruct((B * L, num_heads * L), jnp.float32),  # attn slab
        jax.ShapeDtypeStruct((B * L, F), jnp.float32),              # ws slab
        jax.ShapeDtypeStruct((B, F), jnp.float32),                  # avg slab
    )

    grid_spec = pltpu.PrefetchScalarGridSpec(
        num_scalar_prefetch=0,
        grid=(n_blocks,),
        in_specs=[
            pl.BlockSpec((BB, L, F), lambda b: (b, 0, 0)),   # x, one block/step
            pl.BlockSpec((F, 3 * F), lambda b: (0, 0)),      # packed W_qkv
            pl.BlockSpec((1, 3 * F), lambda b: (0, 0)),      # packed b_qkv
            pl.BlockSpec((M, M), lambda b: (0, 0)),          # block-diag mask
        ],
        out_specs=[
            pl.BlockSpec((BB * L, num_heads * L), lambda b: (b, 0)),
            pl.BlockSpec((BB * L, F), lambda b: (b, 0)),
            pl.BlockSpec((BB, F), lambda b: (b, 0)),
        ],
    )

    attn_slab, ws_slab, avg_slab = pl.pallas_call(
        kernel,
        out_shape=out_shapes,
        grid_spec=grid_spec,
        compiler_params=pltpu.CompilerParams(
            dimension_semantics=("parallel",)),
    )(x, wqkv, bqkv, maskf)

    # Cheap XLA reshapes back to the PyTorch output layouts (~2 KB each).
    attn_w = attn_slab.reshape(B, L, num_heads, L).transpose(0, 2, 1, 3)
    weighted_sum = ws_slab.reshape(B, L, F)
    weighted_avg = avg_slab.reshape(B, 1, F)
    return attn_w, weighted_avg, weighted_sum


def _reference(x, wq, bq, wk, bk, wv, bv, *, num_heads):
    """Pure-JAX reference mirroring the PyTorch forward (mask=None)."""
    B, L, F = x.shape
    D = F // num_heads
    q = x @ wq + bq
    k = x @ wk + bk
    v = x @ wv + bv
    q = q.reshape(B, L, num_heads, D).transpose(0, 2, 1, 3)
    k = k.reshape(B, L, num_heads, D).transpose(0, 2, 1, 3)
    v = v.reshape(B, L, num_heads, D).transpose(0, 2, 1, 3)
    scores = jnp.einsum("bhld,bhmd->bhlm", q, k) / (D ** 0.5)
    attn = jax.nn.softmax(scores, axis=-1)
    ws = jnp.einsum("bhlm,bhmd->bhld", attn, v).transpose(0, 2, 1, 3).reshape(B, L, F)
    avg = ws.mean(axis=1, keepdims=True)
    return attn, avg, ws


if __name__ == "__main__":
    # Small shapes consistent with the module: batch=2, seq (max_history_len)=8,
    # feature_dim=32, num_heads=4 -> head_dim=8.
    B, L, F, H = 2, 8, 32, 4

    key = jax.random.PRNGKey(0)
    kx, kq, kbq, kk, kbk, kv, kbv = jax.random.split(key, 7)

    x = jax.random.normal(kx, (B, L, F), dtype=jnp.float32)
    wq = jax.random.normal(kq, (F, F), dtype=jnp.float32) * 0.1
    bq = jax.random.normal(kbq, (F,), dtype=jnp.float32) * 0.1
    wk = jax.random.normal(kk, (F, F), dtype=jnp.float32) * 0.1
    bk = jax.random.normal(kbk, (F,), dtype=jnp.float32) * 0.1
    wv = jax.random.normal(kv, (F, F), dtype=jnp.float32) * 0.1
    bv = jax.random.normal(kbv, (F,), dtype=jnp.float32) * 0.1

    attn_w, avg_out, weighted_sum = multi_head_self_attention(
        x, wq, bq, wk, bk, wv, bv, num_heads=H)
    jax.block_until_ready((attn_w, avg_out, weighted_sum))

    # Sanity check against the pure-JAX reference (tolerance covers the
    # Newton-refined approximate reciprocal and the folded-scale rounding).
    ref_attn, ref_avg, ref_ws = _reference(x, wq, bq, wk, bk, wv, bv, num_heads=H)
    assert attn_w.shape == (B, H, L, L)
    assert avg_out.shape == (B, 1, F)
    assert weighted_sum.shape == (B, L, F)
    assert jnp.allclose(attn_w, ref_attn, atol=1e-4, rtol=1e-4)
    assert jnp.allclose(weighted_sum, ref_ws, atol=1e-4, rtol=1e-4)
    assert jnp.allclose(avg_out, ref_avg, atol=1e-4, rtol=1e-4)

    print("KERNEL_OK")
</pallas_src>

<mosaic_0001>
module attributes {stable_mosaic.version = 11 : i64} {
  func.func @_mhsa_kernel(%arg0: i32, %arg1: memref<2x8x32xf32, #tpu.memory_space<vmem>>, %arg2: memref<32x96xf32, #tpu.memory_space<vmem>>, %arg3: memref<1x96xf32, #tpu.memory_space<vmem>>, %arg4: memref<64x64xf32, #tpu.memory_space<vmem>>, %arg5: memref<16x32xf32, #tpu.memory_space<vmem>>, %arg6: memref<16x32xf32, #tpu.memory_space<vmem>>, %arg7: memref<2x32xf32, #tpu.memory_space<vmem>>) attributes {dimension_semantics = [#tpu.dimension_semantics<parallel>], iteration_bounds = array<i64: 1>, scalar_prefetch = 0 : i64, scratch_operands = 0 : i64, tpu.core_type = #tpu.core_type<tc>, window_params = [{transform_indices = @transform_0, window_bounds = array<i64: 2, 8, 32>}, {pipeline_mode = #tpu.pipeline_mode<synchronous>, transform_indices = @transform_1, window_bounds = array<i64: 32, 96>}, {pipeline_mode = #tpu.pipeline_mode<synchronous>, transform_indices = @transform_2, window_bounds = array<i64: 1, 96>}, {pipeline_mode = #tpu.pipeline_mode<synchronous>, transform_indices = @transform_3, window_bounds = array<i64: 64, 64>}, {transform_indices = @transform_4, window_bounds = array<i64: 16, 32>}, {transform_indices = @transform_5, window_bounds = array<i64: 16, 32>}, {transform_indices = @transform_6, window_bounds = array<i64: 2, 32>}]} {
    %c0 = arith.constant 0 : index
    %c0_0 = arith.constant 0 : index
    %c0_1 = arith.constant 0 : index
    %0 = vector.load %arg1[%c0, %c0_0, %c0_1] : memref<2x8x32xf32, #tpu.memory_space<vmem>>, vector<2x8x32xf32>
    %1 = vector.shape_cast %0 : vector<2x8x32xf32> to vector<16x32xf32>
    %c0_2 = arith.constant 0 : index
    %c0_3 = arith.constant 0 : index
    %2 = vector.load %arg2[%c0_2, %c0_3] : memref<32x96xf32, #tpu.memory_space<vmem>>, vector<32x96xf32>
    %cst = arith.constant dense<0.000000e+00> : vector<16x96xf32>
    %3 = tpu.matmul %1, %2, %cst {dimension_numbers = #tpu.dot_dimension_numbers<[1], [0], [0], [1], [0, 0, 1, 1], [], []>} : vector<16x32xf32>, vector<32x96xf32>, vector<16x96xf32> -> vector<16x96xf32>
    %c0_4 = arith.constant 0 : index
    %c0_5 = arith.constant 0 : index
    %4 = vector.load %arg3[%c0_4, %c0_5] : memref<1x96xf32, #tpu.memory_space<vmem>>, vector<1x96xf32>
    %5 = vector.broadcast %4 : vector<1x96xf32> to vector<16x96xf32>
    %6 = arith.addf %3, %5 : vector<16x96xf32>
    %7 = vector.extract_strided_slice %6 {offsets = [0, 0], sizes = [16, 32], strides = [1, 1]} : vector<16x96xf32> to vector<16x32xf32>
    %8 = vector.extract_strided_slice %6 {offsets = [0, 32], sizes = [16, 32], strides = [1, 1]} : vector<16x96xf32> to vector<16x32xf32>
    %9 = vector.extract_strided_slice %6 {offsets = [0, 64], sizes = [16, 32], strides = [1, 1]} : vector<16x96xf32> to vector<16x32xf32>
    %10 = vector.extract_strided_slice %7 {offsets = [0, 0], sizes = [16, 8], strides = [1, 1]} : vector<16x32xf32> to vector<16x8xf32>
    %11 = vector.extract_strided_slice %7 {offsets = [0, 8], sizes = [16, 8], strides = [1, 1]} : vector<16x32xf32> to vector<16x8xf32>
    %12 = vector.extract_strided_slice %7 {offsets = [0, 16], sizes = [16, 8], strides = [1, 1]} : vector<16x32xf32> to vector<16x8xf32>
    %13 = vector.extract_strided_slice %7 {offsets = [0, 24], sizes = [16, 8], strides = [1, 1]} : vector<16x32xf32> to vector<16x8xf32>
    %14 = tpu.concatenate %10, %11, %12, %13 in 0 : vector<16x8xf32>, vector<16x8xf32>, vector<16x8xf32>, vector<16x8xf32> -> vector<64x8xf32>
    %15 = vector.extract_strided_slice %8 {offsets = [0, 0], sizes = [16, 8], strides = [1, 1]} : vector<16x32xf32> to vector<16x8xf32>
    %16 = vector.extract_strided_slice %8 {offsets = [0, 8], sizes = [16, 8], strides = [1, 1]} : vector<16x32xf32> to vector<16x8xf32>
    %17 = vector.extract_strided_slice %8 {offsets = [0, 16], sizes = [16, 8], strides = [1, 1]} : vector<16x32xf32> to vector<16x8xf32>
    %18 = vector.extract_strided_slice %8 {offsets = [0, 24], sizes = [16, 8], strides = [1, 1]} : vector<16x32xf32> to vector<16x8xf32>
    %19 = tpu.concatenate %15, %16, %17, %18 in 0 : vector<16x8xf32>, vector<16x8xf32>, vector<16x8xf32>, vector<16x8xf32> -> vector<64x8xf32>
    %20 = vector.extract_strided_slice %9 {offsets = [0, 0], sizes = [16, 8], strides = [1, 1]} : vector<16x32xf32> to vector<16x8xf32>
    %21 = vector.extract_strided_slice %9 {offsets = [0, 8], sizes = [16, 8], strides = [1, 1]} : vector<16x32xf32> to vector<16x8xf32>
    %22 = vector.extract_strided_slice %9 {offsets = [0, 16], sizes = [16, 8], strides = [1, 1]} : vector<16x32xf32> to vector<16x8xf32>
    %23 = vector.extract_strided_slice %9 {offsets = [0, 24], sizes = [16, 8], strides = [1, 1]} : vector<16x32xf32> to vector<16x8xf32>
    %24 = tpu.concatenate %20, %21, %22, %23 in 0 : vector<16x8xf32>, vector<16x8xf32>, vector<16x8xf32>, vector<16x8xf32> -> vector<64x8xf32>
    %cst_6 = arith.constant dense<0.000000e+00> : vector<64x64xf32>
    %25 = tpu.matmul %14, %19, %cst_6 {dimension_numbers = #tpu.dot_dimension_numbers<[1], [1], [0], [0], [0, 0, 1, 0], [], []>} : vector<64x8xf32>, vector<64x8xf32>, vector<64x64xf32> -> vector<64x64xf32>
    %c0_7 = arith.constant 0 : index
    %c0_8 = arith.constant 0 : index
    %26 = vector.load %arg4[%c0_7, %c0_8] : memref<64x64xf32, #tpu.memory_space<vmem>>, vector<64x64xf32>
    %cst_9 = arith.constant 1.000000e+00 : f32
    %27 = vector.broadcast %cst_9 : f32 to vector<64x64xf32>
    %28 = arith.subf %26, %27 : vector<64x64xf32>
    %cst_10 = arith.constant 0.000000e+00 : f32
    %cst_11 = arith.constant -1.000000e+30 : f32
    %29 = arith.subf %cst_10, %cst_11 : f32
    %30 = vector.broadcast %29 : f32 to vector<64x64xf32>
    %31 = arith.mulf %28, %30 : vector<64x64xf32>
    %32 = arith.addf %25, %31 : vector<64x64xf32>
    %cst_12 = arith.constant dense<0xFF800000> : vector<64xf32>
    %33 = vector.multi_reduction <maximumf>, %32, %cst_12 [1] : vector<64x64xf32> to vector<64xf32>
    %34 = vector.shape_cast %33 : vector<64xf32> to vector<64x1xf32>
    %35 = vector.broadcast %34 : vector<64x1xf32> to vector<64x64xf32>
    %36 = arith.subf %32, %35 : vector<64x64xf32>
    %37 = math.exp %36 : vector<64x64xf32>
    %38 = arith.mulf %37, %26 : vector<64x64xf32>
    %cst_13 = arith.constant dense<0.000000e+00> : vector<64xf32>
    %39 = vector.multi_reduction <add>, %38, %cst_13 [1] : vector<64x64xf32> to vector<64xf32>
    %40 = vector.shape_cast %39 : vector<64xf32> to vector<64x1xf32>
    %41 = tpu.reciprocal %40 {approx = true} : vector<64x1xf32> -> vector<64x1xf32>
    %42 = arith.mulf %40, %41 : vector<64x1xf32>
    %cst_14 = arith.constant 2.000000e+00 : f32
    %43 = vector.broadcast %cst_14 : f32 to vector<64x1xf32>
    %44 = arith.subf %43, %42 : vector<64x1xf32>
    %45 = arith.mulf %41, %44 : vector<64x1xf32>
    %46 = vector.broadcast %45 : vector<64x1xf32> to vector<64x64xf32>
    %47 = arith.mulf %38, %46 : vector<64x64xf32>
    %cst_15 = arith.constant dense<0.000000e+00> : vector<64x8xf32>
    %48 = tpu.matmul %47, %24, %cst_15 {dimension_numbers = #tpu.dot_dimension_numbers<[1], [0], [0], [1], [0, 0, 1, 1], [], []>} : vector<64x64xf32>, vector<64x8xf32>, vector<64x8xf32> -> vector<64x8xf32>
    %49 = vector.extract_strided_slice %48 {offsets = [0, 0], sizes = [16, 8], strides = [1, 1]} : vector<64x8xf32> to vector<16x8xf32>
    %50 = vector.extract_strided_slice %48 {offsets = [16, 0], sizes = [16, 8], strides = [1, 1]} : vector<64x8xf32> to vector<16x8xf32>
    %51 = vector.extract_strided_slice %48 {offsets = [32, 0], sizes = [16, 8], strides = [1, 1]} : vector<64x8xf32> to vector<16x8xf32>
    %52 = vector.extract_strided_slice %48 {offsets = [48, 0], sizes = [16, 8], strides = [1, 1]} : vector<64x8xf32> to vector<16x8xf32>
    %53 = tpu.concatenate %49, %50, %51, %52 in 1 : vector<16x8xf32>, vector<16x8xf32>, vector<16x8xf32>, vector<16x8xf32> -> vector<16x32xf32>
    %54 = vector.extract_strided_slice %47 {offsets = [0, 0], sizes = [8, 8], strides = [1, 1]} : vector<64x64xf32> to vector<8x8xf32>
    %55 = vector.extract_strided_slice %47 {offsets = [8, 8], sizes = [8, 8], strides = [1, 1]} : vector<64x64xf32> to vector<8x8xf32>
    %56 = tpu.concatenate %54, %55 in 0 : vector<8x8xf32>, vector<8x8xf32> -> vector<16x8xf32>
    %57 = vector.extract_strided_slice %47 {offsets = [16, 16], sizes = [8, 8], strides = [1, 1]} : vector<64x64xf32> to vector<8x8xf32>
    %58 = vector.extract_strided_slice %47 {offsets = [24, 24], sizes = [8, 8], strides = [1, 1]} : vector<64x64xf32> to vector<8x8xf32>
    %59 = tpu.concatenate %57, %58 in 0 : vector<8x8xf32>, vector<8x8xf32> -> vector<16x8xf32>
    %60 = vector.extract_strided_slice %47 {offsets = [32, 32], sizes = [8, 8], strides = [1, 1]} : vector<64x64xf32> to vector<8x8xf32>
    %61 = vector.extract_strided_slice %47 {offsets = [40, 40], sizes = [8, 8], strides = [1, 1]} : vector<64x64xf32> to vector<8x8xf32>
    %62 = tpu.concatenate %60, %61 in 0 : vector<8x8xf32>, vector<8x8xf32> -> vector<16x8xf32>
    %63 = vector.extract_strided_slice %47 {offsets = [48, 48], sizes = [8, 8], strides = [1, 1]} : vector<64x64xf32> to vector<8x8xf32>
    %64 = vector.extract_strided_slice %47 {offsets = [56, 56], sizes = [8, 8], strides = [1, 1]} : vector<64x64xf32> to vector<8x8xf32>
    %65 = tpu.concatenate %63, %64 in 0 : vector<8x8xf32>, vector<8x8xf32> -> vector<16x8xf32>
    %66 = tpu.concatenate %56, %59, %62, %65 in 1 : vector<16x8xf32>, vector<16x8xf32>, vector<16x8xf32>, vector<16x8xf32> -> vector<16x32xf32>
    %67 = vector.extract_strided_slice %53 {offsets = [0, 0], sizes = [8, 32], strides = [1, 1]} : vector<16x32xf32> to vector<8x32xf32>
    %cst_16 = arith.constant dense<0.000000e+00> : vector<32xf32>
    %68 = vector.multi_reduction <add>, %67, %cst_16 [0] : vector<8x32xf32> to vector<32xf32>
    %69 = vector.shape_cast %68 : vector<32xf32> to vector<1x32xf32>
    %cst_17 = arith.constant 8.000000e+00 : f32
    %70 = vector.broadcast %cst_17 : f32 to vector<1x32xf32>
    %71 = arith.divf %69, %70 : vector<1x32xf32>
    %72 = vector.extract_strided_slice %53 {offsets = [8, 0], sizes = [8, 32], strides = [1, 1]} : vector<16x32xf32> to vector<8x32xf32>
    %cst_18 = arith.constant dense<0.000000e+00> : vector<32xf32>
    %73 = vector.multi_reduction <add>, %72, %cst_18 [0] : vector<8x32xf32> to vector<32xf32>
    %74 = vector.shape_cast %73 : vector<32xf32> to vector<1x32xf32>
    %cst_19 = arith.constant 8.000000e+00 : f32
    %75 = vector.broadcast %cst_19 : f32 to vector<1x32xf32>
    %76 = arith.divf %74, %75 : vector<1x32xf32>
    %77 = tpu.concatenate %71, %76 in 0 : vector<1x32xf32>, vector<1x32xf32> -> vector<2x32xf32>
    %c0_20 = arith.constant 0 : index
    %c0_21 = arith.constant 0 : index
    %78 = vector.load %arg5[%c0_20, %c0_21] : memref<16x32xf32, #tpu.memory_space<vmem>>, vector<16x32xf32>
    tpu.vector_store %arg5[%c0_20, %c0_21], %66 {strides = array<i32>} : memref<16x32xf32, #tpu.memory_space<vmem>>, vector<16x32xf32>,
    %c0_22 = arith.constant 0 : index
    %c0_23 = arith.constant 0 : index
    %79 = vector.load %arg6[%c0_22, %c0_23] : memref<16x32xf32, #tpu.memory_space<vmem>>, vector<16x32xf32>
    tpu.vector_store %arg6[%c0_22, %c0_23], %53 {strides = array<i32>} : memref<16x32xf32, #tpu.memory_space<vmem>>, vector<16x32xf32>,
    %c0_24 = arith.constant 0 : index
    %c0_25 = arith.constant 0 : index
    %80 = vector.load %arg7[%c0_24, %c0_25] : memref<2x32xf32, #tpu.memory_space<vmem>>, vector<2x32xf32>
    tpu.vector_store %arg7[%c0_24, %c0_25], %77 {strides = array<i32>} : memref<2x32xf32, #tpu.memory_space<vmem>>, vector<2x32xf32>,
    return
  }
  func.func @transform_0(%arg0: i32) -> (i32, i32, i32) {
    %c0_i32 = arith.constant 0 : i32
    %c0_i32_0 = arith.constant 0 : i32
    %c0_i32_1 = arith.constant 0 : i32
    return %arg0, %c0_i32, %c0_i32_0 : i32, i32, i32
  }
  func.func @transform_1(%arg0: i32) -> (i32, i32) {
    %c0_i32 = arith.constant 0 : i32
    %c0_i32_0 = arith.constant 0 : i32
    %c0_i32_1 = arith.constant 0 : i32
    return %c0_i32, %c0_i32_0 : i32, i32
  }
  func.func @transform_2(%arg0: i32) -> (i32, i32) {
    %c0_i32 = arith.constant 0 : i32
    %c0_i32_0 = arith.constant 0 : i32
    %c0_i32_1 = arith.constant 0 : i32
    return %c0_i32, %c0_i32_0 : i32, i32
  }
  func.func @transform_3(%arg0: i32) -> (i32, i32) {
    %c0_i32 = arith.constant 0 : i32
    %c0_i32_0 = arith.constant 0 : i32
    %c0_i32_1 = arith.constant 0 : i32
    return %c0_i32, %c0_i32_0 : i32, i32
  }
  func.func @transform_4(%arg0: i32) -> (i32, i32) {
    %c0_i32 = arith.constant 0 : i32
    %c0_i32_0 = arith.constant 0 : i32
    return %arg0, %c0_i32 : i32, i32
  }
  func.func @transform_5(%arg0: i32) -> (i32, i32) {
    %c0_i32 = arith.constant 0 : i32
    %c0_i32_0 = arith.constant 0 : i32
    return %arg0, %c0_i32 : i32, i32
  }
  func.func @transform_6(%arg0: i32) -> (i32, i32) {
    %c0_i32 = arith.constant 0 : i32
    %c0_i32_0 = arith.constant 0 : i32
    return %arg0, %c0_i32 : i32, i32
  }
}

</mosaic_0001>

<bundles_post_ra>
// kernel: tpu_custom_call.1
= control target key start
LH: loop header
LB: loop body
LE: loop exit
PB: predicated region body
PF: predicated region fallthrough
CT: control target
= control target key end

     0   :  { %12 = vsyncpa [#allocation3], 0  ;;  %s1491_s0 = inlined_call_operand.hbm [shape: f32[2,8,32], index: 0, kind: input, shape index: {}]   ;;  %s1492_s1 = inlined_call_operand.hbm [shape: f32[32,96], index: 1, kind: input, shape index: {}]   ;;  %s1493_s2 = inlined_call_operand.vmem [shape: f32[1,96], index: 2, kind: input, shape index: {}]   ;;  %s1494_s3 = inlined_call_operand.hbm [shape: f32[64,64], index: 3, kind: input, shape index: {}]   ;;  %s1495_s4 = inlined_call_operand.hbm [shape: f32[16,32], index: 4, kind: output, shape index: {0}]   ;;  %s1496_s5 = inlined_call_operand.hbm [shape: f32[16,32], index: 5, kind: output, shape index: {1}]   ;;  %s1497_s6 = inlined_call_operand.hbm [shape: f32[2,32], index: 6, kind: output, shape index: {2}]  }
   0x1   :  { %13 = vsyncpa [#allocation6], 0 }
   0x2   :  { %14 = vsyncpa [#allocation4], 0 }
   0x3   :  { %15 = vsyncpa [#allocation10], 0  ;;  %s1176_s21 = smov [#allocation5]   ;;  %s1177_s23 = smov [#allocation2]  }
   0x4   :  { %s33_s22 = sshll.u32 %s1176_s21, 4  ;;  %s21_s24 = sshll.u32 %s1177_s23, 4  ;;  %s34_s22 = int_to_ptr.vmem [resolvable:$true] %s33_s22  ;;  %s1226_s24 = int_to_ptr.vmem [resolvable:$true] %s21_s24 }
   0x5   :  { %s1036_s27 = scalar_lea.hbm %s1492_s1, 512 }
   0x6   :  { %p1037_p0 = scmp.ne.s32.totalorder %s1492_s1, %s1036_s27  ;;  %p1040_p1 = scmp.lt.u32.totalorder %s1036_s27, %s1492_s1 }
   0x8   :  { %p1042_p2 = pnand %p1040_p1, %p1037_p0 }
   0xa   :  { %1045 = shalt.err (!%p1042_p2)
}
   0xb   :  { %s1046_s8 = scalar_lea.vmem %s34_s22, 512  ;;  %p1051_p4 = scmp.lt.s32.totalorder %s34_s22, %s34_s22 }
   0xc   :  { %p1047_p3 = scmp.ne.s32.totalorder %s34_s22, %s1046_s8  ;;  %p1052_p5 = scmp.lt.s32.totalorder %s1046_s8, %s1046_s8 }
   0xe   :  { %p1053_p6 = por %p1052_p5, %p1051_p4 }
  0x10   :  { %p1054_p7 = pnand %p1053_p6, %p1047_p3 }
  0x12   :  { %1057 = shalt.err (!%p1054_p7)
}
  0x13   :  { %s1178_s9 = smov 128   ;;  %s1179_s10 = smov 8  }
  0x14   :  { %39 = dma.hbm_to_vmem [thread:$0]  %s1492_s1, 512, %s34_s22, [#allocation6], %s1178_s9, %s1178_s9, %s1179_s10  }
  0x15   :  { %s1058_s15 = scalar_lea.hbm %s1491_s0, 256 }
  0x16   :  { %p1059_p8 = scmp.ne.s32.totalorder %s1491_s0, %s1058_s15  ;;  %p1062_p9 = scmp.lt.u32.totalorder %s1058_s15, %s1491_s0 }
  0x18   :  { %p1064_p10 = pnand %p1062_p9, %p1059_p8 }
  0x1a   :  { %1067 = shalt.err (!%p1064_p10)
}
  0x1b   :  { %s1068_s20 = scalar_lea.vmem %s1226_s24, 256  ;;  %p1073_p12 = scmp.lt.s32.totalorder %s1226_s24, %s1226_s24 }
  0x1c   :  { %p1069_p11 = scmp.ne.s32.totalorder %s1226_s24, %s1068_s20  ;;  %p1074_p13 = scmp.lt.s32.totalorder %s1068_s20, %s1068_s20 }
  0x1e   :  { %p1075_p0 = por %p1074_p13, %p1073_p12 }
  0x20   :  { %p1076_p1 = pnand %p1075_p0, %p1069_p11 }
  0x22   :  { %1079 = shalt.err (!%p1076_p1)
}
  0x23   :  { %27 = dma.hbm_to_vmem [thread:$0]  %s1491_s0, 256, %s1226_s24, [#allocation3], %s1178_s9, %s1178_s9, %s1179_s10  }
  0x24   :  { %s1180_s22 = smov [#allocation7]   ;;  %s1080_s27 = scalar_lea.hbm %s1494_s3, 1024 }
  0x25   :  { %s47_s23 = sshll.u32 %s1180_s22, 4  ;;  %p1081_p2 = scmp.ne.s32.totalorder %s1494_s3, %s1080_s27  ;;  %s48_s23 = int_to_ptr.vmem [resolvable:$true] %s47_s23 }
  0x26   :  { %p1084_p3 = scmp.lt.u32.totalorder %s1080_s27, %s1494_s3 }
  0x28   :  { %p1086_p4 = pnand %p1084_p3, %p1081_p2 }
  0x2a   :  { %1089 = shalt.err (!%p1086_p4)
}
  0x2b   :  { %s1090_s8 = scalar_lea.vmem %s48_s23, 1024  ;;  %p1095_p6 = scmp.lt.s32.totalorder %s48_s23, %s48_s23 }
  0x2c   :  { %p1091_p5 = scmp.ne.s32.totalorder %s48_s23, %s1090_s8  ;;  %p1096_p7 = scmp.lt.s32.totalorder %s1090_s8, %s1090_s8 }
  0x2e   :  { %p1097_p8 = por %p1096_p7, %p1095_p6 }
  0x30   :  { %p1098_p9 = pnand %p1097_p8, %p1091_p5 }
  0x32   :  { %1101 = shalt.err (!%p1098_p9)
}
  0x33   :  { %53 = dma.hbm_to_vmem [thread:$0]  %s1494_s3, 1024, %s48_s23, [#allocation6], %s1178_s9, %s1178_s9, %s1179_s10  }
  0x34   :  { %1168 = dma.done.wait [#allocation3], 256  }
  0x35   :  { %1169 = vsyncadd [#allocation3], 4294967040 }
  0x36   :  { %1170 = dma.done.wait [#allocation6], 1536  }
  0x37   :  { %1171 = vsyncadd [#allocation6], 4294965760  ;;  %vm76_vm0 = vcmask 261120   ;;  %v65_v0 = vld [vmem:[#allocation5] sm:$0xff]  ;;  %v66_v1 = vld [vmem:[#allocation5 + $0x8] sm:$0xff]  ;;  %vm212_vm1 = vcmask 64512  }
  0x38   :  { %v67_v2 = vld [vmem:[#allocation5 + $0x10] sm:$0xff]  ;;  %v901_v3 = vpack.c.bf16 %v66_v1, %v65_v0  ;;  %v68_v4 = vld [vmem:[#allocation5 + $0x18] sm:$0xff]  ;;  %s1181_s12 = smov 112   ;;  %s1182_s13 = smov 120   ;;  %vm1304_vm2 = vmpackc.low %vm212_vm1, %vm212_vm1  ;;  %vm350_vm3 = vcmask 523264   ;;  %vm650_vm4 = vcmask 130048  }
  0x39   :  { %v63_v5 = vld [vmem:[#allocation2] sm:$0xff]  ;;  %v905_v6 = vpack.c.bf16 %v68_v4, %v67_v2  ;;  %v64_v7 = vld [vmem:[#allocation2 + $0x8] sm:$0xff]  ;;  %s1183_s14 = smov 104   ;;  %v1331_v40 = vld [vmem:[#allocation7 + $0x8] sm:$0xff]  ;;  %s1185_s15 = smov 64   ;;  %vm653_vm5 = vcmask 195584  }
  0x3a   :  { %842 = vmatprep.mubr.msk.f32.mxu0 %vm76_vm0, %v63_v5  ;;  %902 = vmatprep.subr.bf16.mxu0 %v901_v3  ;;  %v761_v8 = vld [vmem:[%s1493_s2] ss:$0 sm:$0xff]  ;;  %s1184_s2 = smov 96   ;;  %v1333_v41 = vld [vmem:[#allocation7] sm:$0xff]  ;;  %v765_v42 = vadd.f32 -1.0, %v1331_v40  ;;  %v1339_v46 = vld [vmem:[#allocation7 + $0x18] sm:$0xff] }
  0x3b   :  { %904 = vmatpush3.bf16.msra.mxu0 %v901_v3  ;;  %v764_v43 = vadd.f32 -1.0, %v1333_v41  ;;  %v1337_v44 = vld [vmem:[#allocation7 + $0x10] sm:$0xff]  ;;  %v1342_v49 = vld [vmem:[#allocation7 + $0x20] sm:$0xff]  ;;  %v767_v51 = vadd.f32 -1.0, %v1339_v46  ;;  %v1345_v54 = vld [vmem:[#allocation7 + $0x28] sm:$0xff]  ;;  %s1186_s16 = smov 16  }
  0x3c   :  { %906 = vmatprep.subr.bf16.mxu0 %v905_v6  ;;  %v189_v45 = vmul.f32 1e+30, %v765_v42  ;;  %v766_v48 = vadd.f32 -1.0, %v1337_v44  ;;  %v768_v57 = vadd.f32 -1.0, %v1342_v49  ;;  %v1349_v59 = vld [vmem:[#allocation7 + $0x30] sm:$0xff]  ;;  %v769_v63 = vadd.f32 -1.0, %v1345_v54 }
  0x3d   :  { %v188_v47 = vmul.f32 1e+30, %v764_v43  ;;  %v191_v60 = vmul.f32 1e+30, %v767_v51  ;;  %v1353_v1 = vld [vmem:[#allocation7 + $0x38] sm:$0xff]  ;;  %v770_v4 = vadd.f32 -1.0, %v1349_v59 }
  0x3e   :  { %v190_v56 = vmul.f32 1e+30, %v766_v48  ;;  %v192_v3 = vmul.f32 1e+30, %v768_v57  ;;  %s1187_s17 = smov 24   ;;  %s1188_s18 = smov [#allocation9]  }
  0x3f   :  { %908 = vmatpush3.bf16.msra.mxu0 %v905_v6  ;;  %v193_v6 = vmul.f32 1e+30, %v769_v63  ;;  %s731_s19 = sshll.u32 %s1188_s18, 4  ;;  %s732_s19 = int_to_ptr.vmem [resolvable:$true] %s731_s19 }
  0x40   :  { %s1102_s20 = scalar_lea.vmem %s732_s19, 256  ;;  %p1107_p11 = scmp.lt.s32.totalorder %s732_s19, %s732_s19 }
  0x41   :  { %p1103_p10 = scmp.ne.s32.totalorder %s732_s19, %s1102_s20  ;;  %p1108_p12 = scmp.lt.s32.totalorder %s1102_s20, %s1102_s20 }
  0x42   :  { %843 = vmatmul.mubr.msk.f32.vlgmr.msra.gmra.mrb[0].mxu0 %vm76_vm0, %v64_v7 }
  0x43   :  { %p1109_p13 = por %p1108_p12, %p1107_p11 }
  0x45   :  { %p1110_p0 = pnand %p1109_p13, %p1103_p10 }
 0x115   :  { %v844_v9 = vpop.f32.mrb[0].mxu0 }
 0x116   :  { %v149_v10 = vpop.f32.mrb[1].mxu0  ;;  %v155_v12 = vadd.f32 %v844_v9, %v761_v8  ;;  %v771_v9 = vadd.f32 -1.0, %v1353_v1 }
 0x117   :  { %v150_v11 = vadd.f32 %v761_v8, %v149_v10 }
 0x119   :  { %164 = vrot.lane.b32.xlu1 %v150_v11, %s1181_s12  ;;  %160 = vrot.lane.b32.xlu0 %v150_v11, %s1182_s13  ;;  %v1290_v13 = vpack.i.bf16 %v155_v12, %v150_v11 }
 0x11a   :  { %861 = vmatprep.mubr.msk.f32.mxu1 %vm212_vm1, %v150_v11 }
 0x11d   :  { %166 = vrot.lane.b32.xlu1 %v155_v12, %s1181_s12  ;;  %162 = vrot.lane.b32.xlu0 %v155_v12, %s1182_s13 }
 0x121   :  { %170 = vrot.lane.b32.xlu1 %v155_v12, %s1183_s14  ;;  %168 = vrot.lane.b32.xlu0 %v150_v11, %s1183_s14 }
 0x125   :  { %965 = vrot.lane.b32.xlu0 %v1290_v13, %s1184_s2 }
 0x18b   :  { %v165_v14 = vpop.permute.xlu1 %164  ;;  %v161_v15 = vpop.permute.xlu0 %160 }
 0x18f   :  { %v167_v16 = vpop.permute.xlu1 %166  ;;  %v163_v17 = vpop.permute.xlu0 %162 }
 0x190   :  { %v1293_v18 = vpack.i.bf16 %v167_v16, %v165_v14  ;;  %v1295_v19 = vpack.i.bf16 %v163_v17, %v161_v15 }
 0x192   :  { %975 = vrot.lane.b32.xlu0 %v1293_v18, %s1184_s2  ;;  %970 = vrot.lane.b32.xlu1 %v1295_v19, %s1184_s2 }
 0x193   :  { %v171_v20 = vpop.permute.xlu1 %170  ;;  %v169_v21 = vpop.permute.xlu0 %168 }
 0x194   :  { %v1299_v22 = vpack.i.bf16 %v171_v20, %v169_v21 }
 0x196   :  { %980 = vrot.lane.b32.xlu1 %v1299_v22, %s1184_s2 }
 0x197   :  { %v966_v23 = vpop.permute.xlu0 %965 }
 0x198   :  { %v968_v24 = vunpack.i.h.bf16 %v966_v23  ;;  %v967_v25 = vunpack.i.l.bf16 %v966_v23 }
 0x19a   :  { %v909_v27 = vpack.c.bf16 %v968_v24, %v967_v25 }
 0x19c   :  { %911 = vmatprep.subr.msk.bf16.mxu1 %vm1304_vm2, %v909_v27 }
 0x19d   :  { %914 = vmatpush3.bf16.xpose.msk.msra.mxu1 %vm1304_vm2, %v909_v27 }
 0x204   :  { %v971_v28 = vpop.permute.xlu1 %970  ;;  %v976_v29 = vpop.permute.xlu0 %975 }
 0x205   :  { %v973_v30 = vunpack.i.h.bf16 %v971_v28  ;;  %v972_v31 = vunpack.i.l.bf16 %v971_v28  ;;  %v978_v32 = vunpack.i.h.bf16 %v976_v29  ;;  %v977_v33 = vunpack.i.l.bf16 %v976_v29 }
 0x207   :  { %v915_v34 = vpack.c.bf16 %v973_v30, %v972_v31  ;;  %v921_v35 = vpack.c.bf16 %v978_v32, %v977_v33 }
 0x208   :  { %v981_v36 = vpop.permute.xlu1 %980 }
 0x209   :  { %917 = vmatprep.subr.msk.bf16.mxu1 %vm1304_vm2, %v915_v34  ;;  %v983_v37 = vunpack.i.h.bf16 %v981_v36  ;;  %v982_v38 = vunpack.i.l.bf16 %v981_v36 }
 0x20a   :  { %920 = vmatpush3.bf16.xpose.msk.msra.mxu1 %vm1304_vm2, %v915_v34 }
 0x20b   :  { %923 = vmatprep.subr.msk.bf16.mxu1 %vm1304_vm2, %v921_v35  ;;  %v927_v39 = vpack.c.bf16 %v983_v37, %v982_v38 }
 0x212   :  { %926 = vmatpush3.bf16.xpose.msk.msra.mxu1 %vm1304_vm2, %v921_v35 }
 0x213   :  { %929 = vmatprep.subr.msk.bf16.mxu1 %vm1304_vm2, %v927_v39 }
 0x21a   :  { %932 = vmatpush3.bf16.xpose.msk.msra.mxu1 %vm1304_vm2, %v927_v39 }
 0x221   :  { %862 = vmatmul.mubr.msk.f32.vlgmr.msra.gmra.mrb[0].mxu1 %vm212_vm1, %v155_v12  ;;  %v194_v12 = vmul.f32 1e+30, %v770_v4 }
 0x222   :  { %864 = vmatprep.mubr.msk.f32.mxu1 %vm212_vm1, %v161_v15  ;;  %v195_v15 = vmul.f32 1e+30, %v771_v9 }
 0x225   :  { %865 = vmatmul.mubr.msk.f32.gmra.mrb[2].mxu1 %vm212_vm1, %v163_v17 }
 0x226   :  { %867 = vmatprep.mubr.msk.f32.mxu1 %vm212_vm1, %v165_v14 }
 0x229   :  { %868 = vmatmul.mubr.msk.f32.gmra.mrb[4].mxu1 %vm212_vm1, %v167_v16 }
 0x22a   :  { %870 = vmatprep.mubr.msk.f32.mxu1 %vm212_vm1, %v169_v21 }
 0x22d   :  { %871 = vmatmul.mubr.msk.f32.gmra.mrb[6].mxu1 %vm212_vm1, %v171_v20 }
 0x2f4   :  { %v863_v50 = vpop.f32.mrb[0].mxu1 }
 0x2f5   :  { %v317_v52 = vadd.f32 %v863_v50, %v189_v45  ;;  %v311_v53 = vpop.f32.mrb[1].mxu1 }
 0x2f6   :  { %v312_v55 = vadd.f32 %v311_v53, %v188_v47 }
 0x2f7   :  { %v354_v58 = vsel %vm350_vm3, %v317_v52, -inf }
 0x2f8   :  { %355 = vmax.xlane.f32.xlu1 %v354_v58  ;;  %v866_v61 = vpop.f32.mrb[2].mxu1  ;;  %v351_v62 = vsel %vm350_vm3, %v312_v55, -inf }
 0x2f9   :  { %v321_v0 = vpop.f32.mrb[3].mxu1  ;;  %352 = vmax.xlane.f32.xlu0 %v351_v62  ;;  %v327_v5 = vadd.f32 %v866_v61, %v191_v60 }
 0x2fa   :  { %v322_v2 = vadd.f32 %v321_v0, %v190_v56 }
 0x2fb   :  { %v360_v20 = vsel %vm350_vm3, %v327_v5, -inf }
 0x2fc   :  { %v869_v7 = vpop.f32.mrb[4].mxu1  ;;  %v357_v8 = vsel %vm350_vm3, %v322_v2, -inf }
 0x2fd   :  { %v331_v10 = vpop.f32.mrb[5].mxu1  ;;  %358 = vmax.xlane.f32.xlu0 %v357_v8  ;;  %v337_v14 = vadd.f32 %v869_v7, %v193_v6 }
 0x2fe   :  { %v332_v11 = vadd.f32 %v331_v10, %v192_v3 }
 0x2ff   :  { %v366_v26 = vsel %vm350_vm3, %v337_v14, -inf }
 0x300   :  { %v872_v16 = vpop.f32.mrb[6].mxu1  ;;  %v363_v17 = vsel %vm350_vm3, %v332_v11, -inf }
 0x301   :  { %v341_v21 = vpop.f32.mrb[7].mxu1  ;;  %364 = vmax.xlane.f32.xlu1 %v363_v17  ;;  %361 = vmax.xlane.f32.xlu0 %v360_v20  ;;  %v347_v24 = vadd.f32 %v872_v16, %v195_v15 }
 0x302   :  { %v1360_v23 = vadd.f32 %v341_v21, %v194_v12 }
 0x303   :  { %v372_v27 = vsel %vm350_vm3, %v347_v24, -inf }
 0x304   :  { %v369_v25 = vsel %vm350_vm3, %v1360_v23, -inf }
 0x305   :  { %370 = vmax.xlane.f32.xlu1 %v369_v25  ;;  %367 = vmax.xlane.f32.xlu0 %v366_v26 }
 0x309   :  { %373 = vmax.xlane.f32.xlu0 %v372_v27 }
 0x316   :  { %985 = vrot.lane.b32.xlu1 %v1290_v13, %s1185_s15 }
 0x385   :  { %v356_v28 = vpop.xlane.xlu1 %355 }
 0x386   :  { %v376_v29 = vsub.f32 %v317_v52, %v356_v28  ;;  %v353_v30 = vpop.xlane.xlu0 %352 }
 0x387   :  { %v375_v31 = vsub.f32 %v312_v55, %v353_v30 }
 0x388   :  { %v385_v32 = vmul.f32 1.442695, %v376_v29 }
 0x389   :  { %v383_v33 = vmul.f32 1.442695, %v375_v31 }
 0x38a   :  { %1004 = vpow2.f32 %v385_v32  ;;  %v359_v34 = vpop.xlane.xlu0 %358 }
 0x38b   :  { %1006 = vpow2.f32 %v383_v33  ;;  %v377_v35 = vsub.f32 %v322_v2, %v359_v34 }
 0x38d   :  { %v387_v36 = vmul.f32 1.442695, %v377_v35 }
 0x38e   :  { %v365_v37 = vpop.xlane.xlu1 %364  ;;  %v362_v38 = vpop.xlane.xlu0 %361 }
 0x38f   :  { %1008 = vpow2.f32 %v387_v36  ;;  %v379_v39 = vsub.f32 %v332_v11, %v365_v37  ;;  %v378_v42 = vsub.f32 %v327_v5, %v362_v38 }
 0x391   :  { %v391_v43 = vmul.f32 1.442695, %v379_v39  ;;  %v389_v45 = vmul.f32 1.442695, %v378_v42 }
 0x392   :  { %v371_v47 = vpop.xlane.xlu1 %370  ;;  %v368_v13 = vpop.xlane.xlu0 %367 }
 0x393   :  { %1010 = vpow2.f32 %v391_v43  ;;  %v380_v48 = vsub.f32 %v337_v14, %v368_v13 }
 0x394   :  { %v1005_v50 = vpop.eup %1004  ;;  %1012 = vpow2.f32 %v389_v45 }
 0x395   :  { %v1007_v51 = vpop.eup %1006  ;;  %v393_v52 = vmul.f32 1.442695, %v380_v48  ;;  %v1369_v53 = vmul.f32 %v1005_v50, %v1331_v40 }
 0x396   :  { %v986_v55 = vpop.permute.xlu1 %985  ;;  %v374_v56 = vpop.xlane.xlu0 %373  ;;  %v399_v57 = vmul.f32 %v1007_v51, %v1333_v41 }
 0x397   :  { %v988_v58 = vunpack.i.h.bf16 %v986_v55  ;;  %v987_v60 = vunpack.i.l.bf16 %v986_v55  ;;  %v382_v61 = vsub.f32 %v347_v24, %v374_v56  ;;  %1014 = vpow2.f32 %v393_v52 }
 0x398   :  { %v410_v62 = vsel %vm350_vm3, %v1369_v53, 0.0  ;;  %v407_v63 = vsel %vm350_vm3, %v399_v57, 0.0 }
 0x399   :  { %v1009_v0 = vpop.eup %1008  ;;  %v933_v2 = vpack.c.bf16 %v988_v58, %v987_v60  ;;  %v397_v3 = vmul.f32 1.442695, %v382_v61  ;;  %411 = vadd.xlane.f32.xlu0 %v410_v62  ;;  %408 = vadd.xlane.f32.xlu1 %v407_v63 }
 0x39a   :  { %v1376_v40 = vmul.f32 %v1009_v0, %v1337_v44 }
 0x39b   :  { %1016 = vpow2.f32 %v397_v3  ;;  %934 = vmatprep.subr.bf16.mxu0 %v933_v2 }
 0x39c   :  { %936 = vmatpush3.bf16.msra.mxu0 %v933_v2  ;;  %v413_v41 = vsel %vm350_vm3, %v1376_v40, 0.0 }
 0x39d   :  { %v1011_v4 = vpop.eup %1010  ;;  %414 = vadd.xlane.f32.xlu1 %v413_v41 }
 0x39e   :  { %v1013_v5 = vpop.eup %1012  ;;  %v1381_v6 = vmul.f32 %v1011_v4, %v1342_v49 }
 0x39f   :  { %v402_v7 = vmul.f32 %v1013_v5, %v1339_v46  ;;  %v381_v46 = vsub.f32 %v1360_v23, %v371_v47 }
 0x3a0   :  { %v419_v8 = vsel %vm350_vm3, %v1381_v6, 0.0 }
 0x3a1   :  { %420 = vadd.xlane.f32.xlu1 %v419_v8  ;;  %v416_v44 = vsel %vm350_vm3, %v402_v7, 0.0  ;;  %v1015_v9 = vpop.eup %1014  ;;  %v395_v15 = vmul.f32 1.442695, %v381_v46 }
 0x3a2   :  { %417 = vadd.xlane.f32.xlu0 %v416_v44  ;;  %v404_v10 = vmul.f32 %v1015_v9, %v1345_v54 }
 0x3a3   :  { %1018 = vpow2.f32 %v395_v15 }
 0x3a4   :  { %v422_v12 = vsel %vm350_vm3, %v404_v10, 0.0 }
 0x3a5   :  { %v1017_v11 = vpop.eup %1016 }
 0x3a6   :  { %423 = vadd.xlane.f32.xlu0 %v422_v12  ;;  %v406_v14 = vmul.f32 %v1017_v11, %v1353_v1 }
 0x3a8   :  { %v428_v49 = vsel %vm350_vm3, %v406_v14, 0.0 }
 0x3aa   :  { %429 = vadd.xlane.f32.xlu0 %v428_v49 }
 0x3ad   :  { %v1019_v54 = vpop.eup %1018 }
 0x3ae   :  { %v1397_v16 = vmul.f32 %v1019_v54, %v1349_v59 }
 0x3b0   :  { %v425_v1 = vsel %vm350_vm3, %v1397_v16, 0.0 }
 0x3b2   :  { %995 = vrot.lane.b32.xlu1 %v1293_v18, %s1185_s15 }
 0x3c0   :  { %990 = vrot.lane.b32.xlu0 %v1295_v19, %s1185_s15 }
 0x3d6   :  { %426 = vadd.xlane.f32.xlu1 %v425_v1 }
 0x3e7   :  { %1000 = vrot.lane.b32.xlu1 %v1299_v22, %s1185_s15 }
 0x426   :  { %v409_v17 = vpop.xlane.xlu1 %408  ;;  %v412_v18 = vpop.xlane.xlu0 %411 }
 0x427   :  { %1020 = vrcp.f32 %v409_v17 }
 0x42a   :  { %v415_v20 = vpop.xlane.xlu1 %414 }
 0x42e   :  { %v421_v24 = vpop.xlane.xlu1 %420 }
 0x42f   :  { %v418_v21 = vpop.xlane.xlu0 %417 }
 0x430   :  { %1022 = vrcp.f32 %v418_v21 }
 0x431   :  { %v1021_v23 = vpop.eup %1020 }
 0x432   :  { %v439_v19 = vmul.f32 %v1021_v23, %v409_v17  ;;  %v996_v29 = vpop.permute.xlu1 %995 }
 0x433   :  { %v424_v25 = vpop.xlane.xlu0 %423  ;;  %v998_v32 = vunpack.i.h.bf16 %v996_v29  ;;  %v997_v33 = vunpack.i.l.bf16 %v996_v29 }
 0x434   :  { %1024 = vrcp.f32 %v424_v25  ;;  %v447_v59 = vsub.f32 2.0, %v439_v19 }
 0x435   :  { %v941_v43 = vpack.c.bf16 %v998_v32, %v997_v33 }
 0x436   :  { %v455_v26 = vmul.f32 %v1021_v23, %v447_v59 }
 0x437   :  { %v430_v27 = vpop.xlane.xlu0 %429 }
 0x438   :  { %1026 = vrcp.f32 %v430_v27  ;;  %v1403_v28 = vmul.f32 %v455_v26, %v399_v57 }
 0x439   :  { %1028 = vrcp.f32 %v412_v18 }
 0x43a   :  { %v1023_v30 = vpop.eup %1022  ;;  %889 = vmatprep.mubr.msk.f32.mxu0 %vm350_vm3, %v1403_v28  ;;  %1030 = vrcp.f32 %v415_v20 }
 0x43b   :  { %v442_v22 = vmul.f32 %v1023_v30, %v418_v21  ;;  %v991_v31 = vpop.permute.xlu0 %990  ;;  %1032 = vrcp.f32 %v421_v24 }
 0x43c   :  { %v993_v34 = vunpack.i.h.bf16 %v991_v31  ;;  %v992_v35 = vunpack.i.l.bf16 %v991_v31 }
 0x43d   :  { %v450_v36 = vsub.f32 2.0, %v442_v22 }
 0x43e   :  { %v1025_v37 = vpop.eup %1024  ;;  %v937_v38 = vpack.c.bf16 %v993_v34, %v992_v35 }
 0x43f   :  { %v458_v39 = vmul.f32 %v1023_v30, %v450_v36  ;;  %v444_v42 = vmul.f32 %v1025_v37, %v424_v25 }
 0x440   :  { %938 = vmatprep.subr.bf16.mxu0 %v937_v38 }
 0x441   :  { %v452_v45 = vsub.f32 2.0, %v444_v42  ;;  %940 = vmatpush3.bf16.msra.mxu0 %v937_v38  ;;  %v466_v47 = vmul.f32 %v458_v39, %v402_v7 }
 0x442   :  { %v1027_v13 = vpop.eup %1026  ;;  %942 = vmatprep.subr.bf16.mxu0 %v941_v43 }
 0x443   :  { %v460_v48 = vmul.f32 %v1025_v37, %v452_v45  ;;  %v446_v50 = vmul.f32 %v1027_v13, %v430_v27  ;;  %659 = vrot.lane.b32.xlu0 %v466_v47, %s1182_s13  ;;  %v1029_v57 = vpop.eup %1028 }
 0x444   :  { %v1031_v58 = vpop.eup %1030  ;;  %v440_v60 = vmul.f32 %v1029_v57, %v412_v18 }
 0x445   :  { %v454_v51 = vsub.f32 2.0, %v446_v50  ;;  %944 = vmatpush3.bf16.msra.mxu0 %v941_v43  ;;  %v468_v52 = vmul.f32 %v460_v48, %v404_v10  ;;  %v441_v61 = vmul.f32 %v1031_v58, %v415_v20  ;;  %v1033_v63 = vpop.eup %1032 }
 0x446   :  { %v448_v0 = vsub.f32 2.0, %v440_v60  ;;  %v443_v3 = vmul.f32 %v1033_v63, %v421_v24 }
 0x447   :  { %v462_v55 = vmul.f32 %v1027_v13, %v454_v51  ;;  %661 = vrot.lane.b32.xlu1 %v468_v52, %s1182_s13  ;;  %v449_v2 = vsub.f32 2.0, %v441_v61 }
 0x448   :  { %v456_v7 = vmul.f32 %v1029_v57, %v448_v0  ;;  %v451_v9 = vsub.f32 2.0, %v443_v3 }
 0x449   :  { %v470_v56 = vmul.f32 %v462_v55, %v406_v14  ;;  %v457_v44 = vmul.f32 %v1031_v58, %v449_v2 }
 0x44a   :  { %v464_v11 = vmul.f32 %v456_v7, %v1369_v53  ;;  %v459_v14 = vmul.f32 %v1033_v63, %v451_v9 }
 0x44b   :  { %663 = vrot.lane.b32.xlu0 %v470_v56, %s1182_s13  ;;  %v465_v12 = vmul.f32 %v457_v44, %v1376_v40 }
 0x44c   :  { %v467_v15 = vmul.f32 %v459_v14, %v1381_v6 }
 0x463   :  { %v427_v62 = vpop.xlane.xlu1 %426 }
 0x464   :  { %1034 = vrcp.f32 %v427_v62 }
 0x467   :  { %v1001_v41 = vpop.permute.xlu1 %1000 }
 0x468   :  { %v1003_v4 = vunpack.i.h.bf16 %v1001_v41  ;;  %v1002_v5 = vunpack.i.l.bf16 %v1001_v41 }
 0x46a   :  { %v945_v8 = vpack.c.bf16 %v1003_v4, %v1002_v5 }
 0x46c   :  { %946 = vmatprep.subr.bf16.mxu0 %v945_v8 }
 0x46d   :  { %948 = vmatpush3.bf16.msra.mxu0 %v945_v8 }
 0x46e   :  { %v1035_v10 = vpop.eup %1034 }
 0x46f   :  { %v445_v49 = vmul.f32 %v1035_v10, %v427_v62 }
 0x470   :  { %890 = vmatmul.mubr.msk.f32.vlgmr.msra.gmra.mrb[2].mxu0 %vm350_vm3, %v464_v11 }
 0x471   :  { %v453_v46 = vsub.f32 2.0, %v445_v49  ;;  %892 = vmatprep.mubr.msk.f32.mxu0 %vm350_vm3, %v465_v12 }
 0x473   :  { %v461_v54 = vmul.f32 %v1035_v10, %v453_v46 }
 0x474   :  { %893 = vmatmul.mubr.msk.f32.gmra.mrb[4].mxu0 %vm350_vm3, %v466_v47 }
 0x475   :  { %895 = vmatprep.mubr.msk.f32.mxu0 %vm350_vm3, %v467_v15  ;;  %v469_v1 = vmul.f32 %v461_v54, %v1397_v16 }
 0x478   :  { %896 = vmatmul.mubr.msk.f32.gmra.mrb[6].mxu0 %vm350_vm3, %v468_v52 }
 0x479   :  { %898 = vmatprep.mubr.msk.f32.mxu0 %vm350_vm3, %v469_v1 }
 0x47c   :  { %899 = vmatmul.mubr.msk.f32.gmra.mrb[8].mxu0 %vm350_vm3, %v470_v56 }
 0x4b5   :  { %v660_v23 = vpop.permute.xlu0 %659 }
 0x4b9   :  { %v662_v19 = vpop.permute.xlu1 %661 }
 0x4bd   :  { %v664_v24 = vpop.permute.xlu0 %663 }
 0x543   :  { %v891_v53 = vpop.f32.mrb[2].mxu0 }
 0x544   :  { %v585_v40 = vpop.f32.mrb[3].mxu0 }
 0x547   :  { %v894_v17 = vpop.f32.mrb[4].mxu0 }
 0x548   :  { %628 = vrot.lane.b32.xlu0 %v894_v17, %s1179_s10  ;;  %v595_v18 = vpop.f32.mrb[5].mxu0 }
 0x549   :  { %626 = vrot.lane.b32.xlu1 %v595_v18, %s1179_s10 }
 0x54b   :  { %v897_v6 = vpop.f32.mrb[6].mxu0 }
 0x54c   :  { %636 = vrot.lane.b32.xlu0 %v897_v6, %s1186_s16  ;;  %v605_v20 = vpop.f32.mrb[7].mxu0 }
 0x54d   :  { %634 = vrot.lane.b32.xlu1 %v605_v20, %s1186_s16 }
 0x54f   :  { %v900_v16 = vpop.f32.mrb[8].mxu0 }
 0x550   :  { %644 = vrot.lane.b32.xlu0 %v900_v16, %s1187_s17  ;;  %v615_v21 = vpop.f32.mrb[9].mxu0 }
 0x551   :  { %642 = vrot.lane.b32.xlu1 %v615_v21, %s1187_s17 }
 0x554   :  { %665 = vrot.lane.b32.xlu0 %v465_v12, %s1182_s13 }
 0x555   :  { %656 = vrot.lane.b32.xlu1 %v464_v11, %s1182_s13 }
 0x558   :  { %671 = vrot.lane.b32.xlu0 %v467_v15, %s1181_s12 }
 0x559   :  { %667 = vrot.lane.b32.xlu1 %v660_v23, %s1182_s13 }
 0x55c   :  { %677 = vrot.lane.b32.xlu0 %v469_v1, %s1183_s14 }
 0x55d   :  { %673 = vrot.lane.b32.xlu1 %v662_v19, %s1181_s12 }
 0x561   :  { %679 = vrot.lane.b32.xlu1 %v664_v24, %s1183_s14 }
 0x5ba   :  { %v629_v25 = vpop.permute.xlu0 %628 }
 0x5bb   :  { %v627_v59 = vpop.permute.xlu1 %626  ;;  %v649_v29 = vsel %vm212_vm1, %v891_v53, %v629_v25 }
 0x5bc   :  { %v648_v30 = vsel %vm212_vm1, %v585_v40, %v627_v59 }
 0x5be   :  { %v637_v26 = vpop.permute.xlu0 %636 }
 0x5bf   :  { %v635_v27 = vpop.permute.xlu1 %634  ;;  %v652_v22 = vsel %vm650_vm4, %v649_v29, %v637_v26 }
 0x5c0   :  { %v651_v32 = vsel %vm650_vm4, %v648_v30, %v635_v27 }
 0x5c2   :  { %v645_v31 = vpop.permute.xlu0 %644 }
 0x5c3   :  { %v655_v33 = vsel %vm653_vm5, %v652_v22, %v645_v31  ;;  %v643_v34 = vpop.permute.xlu1 %642 }
 0x5c4   :  { %v698_v35 = vsel %vm76_vm0, %v655_v33, 0.0  ;;  %711 = vst.msk [vmem:[#allocation9 + $0x8] sm:$0xff] %vm76_vm0, %v655_v33  ;;  %v654_v36 = vsel %vm653_vm5, %v651_v32, %v643_v34 }
 0x5c5   :  { %v699_v37 = vrot.slane %v698_v35, 4  ;;  %v689_v38 = vsel %vm76_vm0, %v654_v36, 0.0  ;;  %710 = vst.msk [vmem:[#allocation9] sm:$0xff] %vm76_vm0, %v654_v36 }
 0x5c6   :  { %v690_v39 = vrot.slane %v689_v38, 4  ;;  %v666_v42 = vpop.permute.xlu0 %665 }
 0x5c7   :  { %1113 = shalt.err (!%p1110_p0)
}
 0x5c8   :  { %s1114_s22 = scalar_lea.hbm %s1496_s5, 256 }
 0x5c9   :  { %p1115_p1 = scmp.ne.s32.totalorder %s1496_s5, %s1114_s22  ;;  %p1118_p2 = scmp.lt.u32.totalorder %s1114_s22, %s1496_s5 }
 0x5cb   :  { %p1120_p3 = pnand %p1118_p2, %p1115_p1 }
 0x5cd   :  { %1123 = shalt.err (!%p1120_p3)
}
 0x5ce   :  { %737 = dma.vmem_to_hbm [thread:$0]  %s732_s19, 256, %s1496_s5, [#allocation10], %s1178_s9, %s1178_s9, %s1179_s10   ;;  %v700_v43 = vadd.f32 %v699_v37, %v698_v35  ;;  %v657_v45 = vpop.permute.xlu1 %656  ;;  %v691_v47 = vadd.f32 %v690_v39, %v689_v38  ;;  %v672_v50 = vpop.permute.xlu0 %671  ;;  %v683_v57 = vsel %vm212_vm1, %v1403_v28, %v666_v42  ;;  %vm706_vm6 = vcmask 1040384  }
 0x5cf   :  { %v685_v60 = vsel %vm650_vm4, %v683_v57, %v672_v50  ;;  %s1189_s5 = smov [#allocation8]   ;;  %s1190_s7 = smov [#allocation11]   ;;  %vm712_vm7 = vcmask 254976  }
 0x5d0   :  { %v701_v13 = vrot.slane %v700_v43, 2  ;;  %v692_v48 = vrot.slane %v691_v47, 2  ;;  %s719_s30 = sshll.u32 %s1189_s5, 4  ;;  %s744_s8 = sshll.u32 %s1190_s7, 4  ;;  %s720_s30 = int_to_ptr.vmem [resolvable:$true] %s719_s30  ;;  %s745_s8 = int_to_ptr.vmem [resolvable:$true] %s744_s8 }
 0x5d1   :  { %s1124_s0 = scalar_lea.vmem %s720_s30, 256  ;;  %p1129_p5 = scmp.lt.s32.totalorder %s720_s30, %s720_s30 }
 0x5d2   :  { %v702_v51 = vadd.f32 %v701_v13, %v700_v43  ;;  %v668_v52 = vpop.permute.xlu1 %667  ;;  %v693_v55 = vadd.f32 %v692_v48, %v691_v47  ;;  %v678_v61 = vpop.permute.xlu0 %677  ;;  %p1125_p4 = scmp.ne.s32.totalorder %s720_s30, %s1124_s0  ;;  %p1130_p6 = scmp.lt.s32.totalorder %s1124_s0, %s1124_s0 }
 0x5d3   :  { %v687_v63 = vsel %vm653_vm5, %v685_v60, %v678_v61  ;;  %v684_v28 = vsel %vm212_vm1, %v657_v45, %v668_v52 }
 0x5d4   :  { %v703_v56 = vrot.slane %v702_v51, 1  ;;  %v694_v58 = vrot.slane %v693_v55, 1  ;;  %708 = vst.msk [vmem:[#allocation8] sm:$0xff] %vm76_vm0, %v687_v63  ;;  %p1131_p7 = por %p1130_p6, %p1129_p5 }
 0x5d6   :  { %v704_v62 = vadd.f32 %v703_v56, %v702_v51  ;;  %v674_v0 = vpop.permute.xlu1 %673  ;;  %v695_v2 = vadd.f32 %v694_v58, %v693_v55  ;;  %p1132_p8 = pnand %p1131_p7, %p1125_p4 }
 0x5d7   :  { %v686_v4 = vsel %vm650_vm4, %v684_v28, %v674_v0 }
 0x5d8   :  { %v705_v3 = vmul.f32 0.125, %v704_v62  ;;  %v697_v41 = vmul.f32 0.125, %v695_v2 }
 0x5da   :  { %v680_v5 = vpop.permute.xlu1 %679  ;;  %v707_v8 = vsel %vm706_vm6, %v697_v41, %v705_v3 }
 0x5db   :  { %v688_v7 = vsel %vm653_vm5, %v686_v4, %v680_v5  ;;  %713 = vst.msk [vmem:[#allocation11] sm:$0x3] %vm712_vm7, %v707_v8 }
 0x5dc   :  { %709 = vst.msk [vmem:[#allocation8 + $0x8] sm:$0xff] %vm76_vm0, %v688_v7 }
 0x5dd   :  { %1135 = shalt.err (!%p1132_p8)
}
 0x5de   :  { %s1136_s11 = scalar_lea.hbm %s1495_s4, 256 }
 0x5df   :  { %p1137_p9 = scmp.ne.s32.totalorder %s1495_s4, %s1136_s11  ;;  %p1140_p10 = scmp.lt.u32.totalorder %s1136_s11, %s1495_s4 }
 0x5e1   :  { %p1142_p11 = pnand %p1140_p10, %p1137_p9 }
 0x5e3   :  { %1145 = shalt.err (!%p1142_p11)
}
 0x5e4   :  { %725 = dma.vmem_to_hbm [thread:$0]  %s720_s30, 256, %s1495_s4, [#allocation4], %s1178_s9, %s1178_s9, %s1179_s10  }
 0x5e5   :  { %s1146_s17 = scalar_lea.vmem %s745_s8, 32  ;;  %p1151_p13 = scmp.lt.s32.totalorder %s745_s8, %s745_s8 }
 0x5e6   :  { %p1147_p12 = scmp.ne.s32.totalorder %s745_s8, %s1146_s17  ;;  %p1152_p0 = scmp.lt.s32.totalorder %s1146_s17, %s1146_s17 }
 0x5e8   :  { %p1153_p1 = por %p1152_p0, %p1151_p13 }
 0x5ea   :  { %p1154_p2 = pnand %p1153_p1, %p1147_p12 }
 0x5ec   :  { %1157 = shalt.err (!%p1154_p2)
}
 0x5ed   :  { %s1158_s20 = scalar_lea.hbm %s1497_s6, 32 }
 0x5ee   :  { %p1159_p3 = scmp.ne.s32.totalorder %s1497_s6, %s1158_s20  ;;  %p1162_p4 = scmp.lt.u32.totalorder %s1158_s20, %s1497_s6 }
 0x5f0   :  { %p1164_p5 = pnand %p1162_p4, %p1159_p3 }
 0x5f2   :  { %1167 = shalt.err (!%p1164_p5)
}
 0x5f3   :  { %747 = dma.vmem_to_hbm [thread:$0]  %s745_s8, 32, %s1497_s6, [#allocation10]  }
 0x5f4   :  { %1172 = dma.done.wait [#allocation4], 256  }
 0x5f5   :  { %1173 = vsyncadd [#allocation4], 4294967040 }
 0x5f6   :  { %1174 = dma.done.wait [#allocation10], 288  }
 0x5f7   :  { %1175 = vsyncadd [#allocation10], 4294967008 }
 0x5f8   :  { %757 = vsyncpa [#allocation3], 1 }
 0x5f9   :  { %758 = vsyncpa [#allocation6], 1 }
 0x5fa   :  { %759 = vsyncpa [#allocation4], 1 }
 0x5fb   :  { %760 = vsyncpa [#allocation10], 1 }

</bundles_post_ra>
